<compile_context>
chip_gen: v7x
topology: tpu7x:2x2x1
jax: 0.10.0
libtpu: 0.0.40
codegen_flags: <defaults>
</compile_context>

<pallas_src>
import functools

import jax
import jax.numpy as jnp
from jax import lax
from jax.experimental import pallas as pl
from jax.experimental.pallas import tpu as pltpu


def _round_up(x, m):
    return ((x + m - 1) // m) * m


def _mmd_kernel(src_ref, tgt_ref, out_ref,
                gxx_ref, gyy_ref, gxy_ref, sqs_ref, sqt_ref, *,
                n_valid, kernel_mul, kernel_num, fix_sigma, mask_needed):
    """K-loop body: accumulate grams + row norms; at the last feature block
    build pairwise squared distances, apply the multi-bandwidth Gaussian
    kernel and write the scalar MMD loss."""
    k = pl.program_id(0)
    nk = pl.num_programs(0)

    s = src_ref[...]                     # (np, tk) native dtype (f32 or bf16)
    t = tgt_ref[...]
    # Contract the last dims of both operands: A @ B.T with no transpose copy.
    dn = (((1,), (1,)), ((), ()))
    gxx = lax.dot_general(s, s, dn, preferred_element_type=jnp.float32)
    gyy = lax.dot_general(t, t, dn, preferred_element_type=jnp.float32)
    gxy = lax.dot_general(s, t, dn, preferred_element_type=jnp.float32)
    # Row squared-norms in f32 (rides the VPU/XLU slots alongside the MXU).
    sf = s.astype(jnp.float32)
    tf = t.astype(jnp.float32)
    ss = jnp.sum(sf * sf, axis=1, keepdims=True)       # (np, 1)
    tt = jnp.sum(tf * tf, axis=1, keepdims=True)       # (np, 1)

    @pl.when(k == 0)
    def _first():                        # direct write: no zero-init + RMW
        gxx_ref[...] = gxx
        gyy_ref[...] = gyy
        gxy_ref[...] = gxy
        sqs_ref[...] = ss
        sqt_ref[...] = tt

    @pl.when(k > 0)
    def _accum():
        gxx_ref[...] += gxx
        gyy_ref[...] += gyy
        gxy_ref[...] += gxy
        sqs_ref[...] += ss
        sqt_ref[...] += tt

    @pl.when(k == nk - 1)
    def _finalize():
        np_rows = gxx_ref.shape[0]

        sqs_col = sqs_ref[...]                          # (np, 1)
        sqt_col = sqt_ref[...]
        sqs_row = jnp.transpose(sqs_col, (1, 0))        # (1, np)
        sqt_row = jnp.transpose(sqt_col, (1, 0))

        if mask_needed:
            rows = lax.broadcasted_iota(jnp.int32, (np_rows, np_rows), 0)
            cols = lax.broadcasted_iota(jnp.int32, (np_rows, np_rows), 1)
            valid = jnp.logical_and(rows < n_valid, cols < n_valid)

        # Convert each gram to a (clamped, masked) distance matrix IN PLACE so
        # only one extra (np,np) value is live at a time.  Masked entries get
        # d = 0; their exp(0) kernel contributions cancel exactly in
        # XX + YY - 2*XY, so no further masking is needed anywhere.
        def to_dist(g_ref, col, row):
            d = jnp.maximum(col + row - 2.0 * g_ref[...], 0.0)
            if mask_needed:
                d = jnp.where(valid, d, 0.0)
            g_ref[...] = d

        to_dist(gxx_ref, sqs_col, sqs_row)
        to_dist(gyy_ref, sqt_col, sqt_row)
        to_dist(gxy_ref, sqs_col, sqt_row)

        mul_half = kernel_mul ** (kernel_num // 2)

        if fix_sigma is None:
            # bandwidth = sum(L2 over the (2n,2n) matrix) / ((2n)^2 - 2n),
            # then /= kernel_mul ** (kernel_num // 2).
            l2_sum = (jnp.sum(gxx_ref[...], keepdims=True)
                      + jnp.sum(gyy_ref[...], keepdims=True)
                      + 2.0 * jnp.sum(gxy_ref[...], keepdims=True))   # (1,1)
            n_samples = 2 * n_valid
            bw0 = l2_sum * jnp.float32(
                1.0 / ((n_samples * n_samples - n_samples) * mul_half))
            neg_inv_bw0 = -1.0 / bw0                    # single (1,1) divide
            scales = [neg_inv_bw0 * jnp.float32(kernel_mul ** (-i))
                      for i in range(kernel_num)]
        else:
            bw0 = fix_sigma / mul_half
            scales = [jnp.float32(-1.0 / (bw0 * kernel_mul ** i))
                      for i in range(kernel_num)]       # static constants

        def ksum(d_ref):
            d = d_ref[...]
            acc = jnp.exp(d * scales[0])
            for sc in scales[1:]:                       # static kernel_num loop
                acc = acc + jnp.exp(d * sc)             # multiply, never divide
            return jnp.sum(acc, keepdims=True)          # (1,1)

        loss = (ksum(gxx_ref) + ksum(gyy_ref) - 2.0 * ksum(gxy_ref)) * (
            jnp.float32(1.0 / (n_valid * n_valid)))
        out_ref[...] = loss


def mmd_loss(source, target, *, kernel_mul=2.0, kernel_num=5, fix_sigma=None,
             block_k=None):
    """JAX/Pallas equivalent of MMDLoss.forward (both sigma paths)."""
    source = jnp.asarray(source)
    target = jnp.asarray(target)
    compute_dtype = jnp.bfloat16 if source.dtype == jnp.bfloat16 else jnp.float32
    source = source.astype(compute_dtype)
    target = target.astype(compute_dtype)

    n, feat = source.shape
    assert target.shape == (n, feat), "source/target must have the same shape"

    np_rows = max(8, _round_up(n, 8))          # sublane-aligned batch (masked)
    itemsize = jnp.dtype(compute_dtype).itemsize

    # ---- VMEM budgeting -----------------------------------------------------
    gram_bytes = 3 * np_rows * np_rows * 4               # f32 gram accumulators
    finalize_bytes = 2 * np_rows * np_rows * 4           # live epilogue temps
    norm_bytes = 2 * np_rows * 128 * 4                   # lane-padded (np,1)
    try:
        phys_vmem = int(pltpu.get_tpu_info().vmem_capacity_bytes)
    except Exception:
        phys_vmem = 64 << 20                             # conservative fallback
    budget = min(phys_vmem, 100 << 20) - (4 << 20)       # compiler headroom

    feat_ceil = _round_up(feat, 128)
    per_col_bytes = 2 * 2 * np_rows * itemsize           # 2 inputs x 2 buffers
    if block_k is None:
        input_budget = max(budget - gram_bytes - finalize_bytes - norm_bytes,
                           per_col_bytes * 128)
        tk_cap = max(128, (input_budget // per_col_bytes) // 128 * 128)
    else:
        tk_cap = _round_up(int(block_k), 128)
    # Balance blocks: minimal padding, largest lane-dense block that fits.
    num_k = max(1, -(-feat_ceil // tk_cap))
    tk = _round_up(-(-feat_ceil // num_k), 128)
    feat_pad = num_k * tk

    input_bytes = 2 * 2 * np_rows * tk * itemsize
    vmem_limit = int(1.25 * (gram_bytes + finalize_bytes + norm_bytes
                             + input_bytes)) + (2 << 20)
    vmem_limit = max(vmem_limit, 32 << 20)
    vmem_limit = min(vmem_limit, min(phys_vmem, 128 << 20))

    # Zero feature padding is distance-invariant; padded rows are masked.
    src_p = jnp.pad(source, ((0, np_rows - n), (0, feat_pad - feat)))
    tgt_p = jnp.pad(target, ((0, np_rows - n), (0, feat_pad - feat)))

    kernel = functools.partial(
        _mmd_kernel, n_valid=n, kernel_mul=float(kernel_mul),
        kernel_num=int(kernel_num),
        fix_sigma=None if fix_sigma is None else float(fix_sigma),
        mask_needed=(np_rows != n))

    out = pl.pallas_call(
        kernel,
        out_shape=jax.ShapeDtypeStruct((1, 1), jnp.float32),
        grid_spec=pltpu.PrefetchScalarGridSpec(
            num_scalar_prefetch=0,
            grid=(num_k,),
            in_specs=[
                pl.BlockSpec((np_rows, tk), lambda k: (0, k)),
                pl.BlockSpec((np_rows, tk), lambda k: (0, k)),
            ],
            out_specs=pl.BlockSpec((1, 1), lambda k: (0, 0)),
            scratch_shapes=[pltpu.VMEM((np_rows, np_rows), jnp.float32)] * 3
                         + [pltpu.VMEM((np_rows, 1), jnp.float32)] * 2,
        ),
        compiler_params=pltpu.CompilerParams(
            dimension_semantics=("arbitrary",),     # K is a reduction axis
            vmem_limit_bytes=vmem_limit),
    )(src_p, tgt_p)

    return out[0, 0]


def _reference_mmd_loss(source, target, *, kernel_mul=2.0, kernel_num=5,
                        fix_sigma=None):
    """Pure-JAX mirror of the PyTorch module (for validation)."""
    n = source.shape[0]
    total = jnp.concatenate([source, target], axis=0).astype(jnp.float32)
    l2 = jnp.sum((total[None, :, :] - total[:, None, :]) ** 2, axis=2)
    if fix_sigma is not None:
        bw = jnp.float32(fix_sigma)
    else:
        ns = total.shape[0]
        bw = jnp.sum(l2) / (ns * ns - ns)
    bw = bw / (kernel_mul ** (kernel_num // 2))
    bws = [bw * kernel_mul ** i for i in range(kernel_num)]
    kernels = sum(jnp.exp(-l2 / b) for b in bws)
    xx, yy = kernels[:n, :n], kernels[n:, n:]
    xy, yx = kernels[:n, n:], kernels[n:, :n]
    return jnp.mean(xx + yy - xy - yx)


if __name__ == "__main__":
    key = jax.random.PRNGKey(0)
    k_src, k_tgt, k_src2, k_tgt2, k_src3, k_tgt3 = jax.random.split(key, 6)

    # Module default config (fix_sigma=None -> data-dependent bandwidth).
    B, D = 16, 32
    source = jax.random.normal(k_src, (B, D), dtype=jnp.float32)
    target = jax.random.normal(k_tgt, (B, D), dtype=jnp.float32) + 0.5

    loss = jax.block_until_ready(mmd_loss(source, target))
    ref = _reference_mmd_loss(source, target)
    assert jnp.allclose(loss, ref, rtol=5e-4, atol=1e-5), (loss, ref)

    # Fixed-sigma path.
    loss_fs = jax.block_until_ready(mmd_loss(source, target, fix_sigma=1.0))
    ref_fs = _reference_mmd_loss(source, target, fix_sigma=1.0)
    assert jnp.allclose(loss_fs, ref_fs, rtol=5e-4, atol=1e-5), (loss_fs, ref_fs)

    # Batch not a multiple of 8 (exercises row padding + masking path).
    B2, D2 = 12, 40
    source2 = jax.random.normal(k_src2, (B2, D2), dtype=jnp.float32)
    target2 = jax.random.normal(k_tgt2, (B2, D2), dtype=jnp.float32) - 0.3
    loss2 = jax.block_until_ready(mmd_loss(source2, target2))
    ref2 = _reference_mmd_loss(source2, target2)
    assert jnp.allclose(loss2, ref2, rtol=5e-4, atol=1e-5), (loss2, ref2)

    # Multiple feature blocks (forces the K-reduction accumulation path).
    B3, D3 = 16, 300
    source3 = jax.random.normal(k_src3, (B3, D3), dtype=jnp.float32)
    target3 = jax.random.normal(k_tgt3, (B3, D3), dtype=jnp.float32) + 0.2
    loss3 = jax.block_until_ready(mmd_loss(source3, target3, block_k=128))
    ref3 = _reference_mmd_loss(source3, target3)
    assert jnp.allclose(loss3, ref3, rtol=5e-4, atol=1e-5), (loss3, ref3)

    # bf16 inputs streamed natively into the MXU (f32 accumulate/epilogue).
    src_bf = source.astype(jnp.bfloat16)
    tgt_bf = target.astype(jnp.bfloat16)
    loss_bf = jax.block_until_ready(mmd_loss(src_bf, tgt_bf))
    ref_bf = _reference_mmd_loss(src_bf.astype(jnp.float32),
                                 tgt_bf.astype(jnp.float32))
    assert jnp.allclose(loss_bf, ref_bf, rtol=5e-3, atol=1e-4), (loss_bf, ref_bf)

    print("KERNEL_OK")
</pallas_src>

<mosaic_0001>
module attributes {stable_mosaic.version = 11 : i64} {
  func.func @_mmd_kernel(%arg0: i32, %arg1: memref<16x128xf32, #tpu.memory_space<vmem>>, %arg2: memref<16x128xf32, #tpu.memory_space<vmem>>, %arg3: memref<1x1xf32, #tpu.memory_space<vmem>>, %arg4: memref<16x16xf32, #tpu.memory_space<vmem>>, %arg5: memref<16x16xf32, #tpu.memory_space<vmem>>, %arg6: memref<16x16xf32, #tpu.memory_space<vmem>>, %arg7: memref<16x1xf32, #tpu.memory_space<vmem>>, %arg8: memref<16x1xf32, #tpu.memory_space<vmem>>) attributes {dimension_semantics = [#tpu.dimension_semantics<arbitrary>], iteration_bounds = array<i64: 1>, scalar_prefetch = 0 : i64, scratch_operands = 5 : i64, tpu.core_type = #tpu.core_type<tc>, window_params = [{transform_indices = @transform_0, window_bounds = array<i64: 16, 128>}, {transform_indices = @transform_1, window_bounds = array<i64: 16, 128>}, {pipeline_mode = #tpu.pipeline_mode<synchronous>, transform_indices = @transform_2, window_bounds = array<i64: 1, 1>}]} {
    %c0 = arith.constant 0 : index
    %c0_0 = arith.constant 0 : index
    %0 = vector.load %arg1[%c0, %c0_0] : memref<16x128xf32, #tpu.memory_space<vmem>>, vector<16x128xf32>
    %c0_1 = arith.constant 0 : index
    %c0_2 = arith.constant 0 : index
    %1 = vector.load %arg2[%c0_1, %c0_2] : memref<16x128xf32, #tpu.memory_space<vmem>>, vector<16x128xf32>
    %cst = arith.constant dense<0.000000e+00> : vector<16x16xf32>
    %2 = tpu.matmul %0, %0, %cst {dimension_numbers = #tpu.dot_dimension_numbers<[1], [1], [0], [0], [0, 0, 1, 0], [], []>} : vector<16x128xf32>, vector<16x128xf32>, vector<16x16xf32> -> vector<16x16xf32>
    %cst_3 = arith.constant dense<0.000000e+00> : vector<16x16xf32>
    %3 = tpu.matmul %1, %1, %cst_3 {dimension_numbers = #tpu.dot_dimension_numbers<[1], [1], [0], [0], [0, 0, 1, 0], [], []>} : vector<16x128xf32>, vector<16x128xf32>, vector<16x16xf32> -> vector<16x16xf32>
    %cst_4 = arith.constant dense<0.000000e+00> : vector<16x16xf32>
    %4 = tpu.matmul %0, %1, %cst_4 {dimension_numbers = #tpu.dot_dimension_numbers<[1], [1], [0], [0], [0, 0, 1, 0], [], []>} : vector<16x128xf32>, vector<16x128xf32>, vector<16x16xf32> -> vector<16x16xf32>
    %5 = arith.mulf %0, %0 : vector<16x128xf32>
    %cst_5 = arith.constant dense<0.000000e+00> : vector<16xf32>
    %6 = vector.multi_reduction <add>, %5, %cst_5 [1] : vector<16x128xf32> to vector<16xf32>
    %7 = vector.shape_cast %6 : vector<16xf32> to vector<16x1xf32>
    %8 = arith.mulf %1, %1 : vector<16x128xf32>
    %cst_6 = arith.constant dense<0.000000e+00> : vector<16xf32>
    %9 = vector.multi_reduction <add>, %8, %cst_6 [1] : vector<16x128xf32> to vector<16xf32>
    %10 = vector.shape_cast %9 : vector<16xf32> to vector<16x1xf32>
    %c0_i32 = arith.constant 0 : i32
    %11 = arith.cmpi eq, %arg0, %c0_i32 : i32
    %12 = arith.extui %11 : i1 to i32
    %c0_i32_7 = arith.constant 0 : i32
    %13 = arith.cmpi ne, %12, %c0_i32_7 : i32
    scf.if %13 {
      %c0_12 = arith.constant 0 : index
      %c0_13 = arith.constant 0 : index
      %20 = vector.load %arg4[%c0_12, %c0_13] : memref<16x16xf32, #tpu.memory_space<vmem>>, vector<16x16xf32>
      tpu.vector_store %arg4[%c0_12, %c0_13], %2 {strides = array<i32>} : memref<16x16xf32, #tpu.memory_space<vmem>>, vector<16x16xf32>,
      %c0_14 = arith.constant 0 : index
      %c0_15 = arith.constant 0 : index
      %21 = vector.load %arg5[%c0_14, %c0_15] : memref<16x16xf32, #tpu.memory_space<vmem>>, vector<16x16xf32>
      tpu.vector_store %arg5[%c0_14, %c0_15], %3 {strides = array<i32>} : memref<16x16xf32, #tpu.memory_space<vmem>>, vector<16x16xf32>,
      %c0_16 = arith.constant 0 : index
      %c0_17 = arith.constant 0 : index
      %22 = vector.load %arg6[%c0_16, %c0_17] : memref<16x16xf32, #tpu.memory_space<vmem>>, vector<16x16xf32>
      tpu.vector_store %arg6[%c0_16, %c0_17], %4 {strides = array<i32>} : memref<16x16xf32, #tpu.memory_space<vmem>>, vector<16x16xf32>,
      %c0_18 = arith.constant 0 : index
      %c0_19 = arith.constant 0 : index
      %23 = vector.load %arg7[%c0_18, %c0_19] : memref<16x1xf32, #tpu.memory_space<vmem>>, vector<16x1xf32>
      tpu.vector_store %arg7[%c0_18, %c0_19], %7 {strides = array<i32>} : memref<16x1xf32, #tpu.memory_space<vmem>>, vector<16x1xf32>,
      %c0_20 = arith.constant 0 : index
      %c0_21 = arith.constant 0 : index
      %24 = vector.load %arg8[%c0_20, %c0_21] : memref<16x1xf32, #tpu.memory_space<vmem>>, vector<16x1xf32>
      tpu.vector_store %arg8[%c0_20, %c0_21], %10 {strides = array<i32>} : memref<16x1xf32, #tpu.memory_space<vmem>>, vector<16x1xf32>,
    } else {
    }
    %c0_i32_8 = arith.constant 0 : i32
    %14 = arith.cmpi sgt, %arg0, %c0_i32_8 : i32
    %15 = arith.extui %14 : i1 to i32
    %c0_i32_9 = arith.constant 0 : i32
    %16 = arith.cmpi ne, %15, %c0_i32_9 : i32
    scf.if %16 {
      %c0_12 = arith.constant 0 : index
      %c0_13 = arith.constant 0 : index
      %20 = vector.load %arg4[%c0_12, %c0_13] : memref<16x16xf32, #tpu.memory_space<vmem>>, vector<16x16xf32>
      %21 = arith.addf %20, %2 : vector<16x16xf32>
      %c0_14 = arith.constant 0 : index
      %c0_15 = arith.constant 0 : index
      %22 = vector.load %arg4[%c0_14, %c0_15] : memref<16x16xf32, #tpu.memory_space<vmem>>, vector<16x16xf32>
      tpu.vector_store %arg4[%c0_14, %c0_15], %21 {strides = array<i32>} : memref<16x16xf32, #tpu.memory_space<vmem>>, vector<16x16xf32>,
      %c0_16 = arith.constant 0 : index
      %c0_17 = arith.constant 0 : index
      %23 = vector.load %arg5[%c0_16, %c0_17] : memref<16x16xf32, #tpu.memory_space<vmem>>, vector<16x16xf32>
      %24 = arith.addf %23, %3 : vector<16x16xf32>
      %c0_18 = arith.constant 0 : index
      %c0_19 = arith.constant 0 : index
      %25 = vector.load %arg5[%c0_18, %c0_19] : memref<16x16xf32, #tpu.memory_space<vmem>>, vector<16x16xf32>
      tpu.vector_store %arg5[%c0_18, %c0_19], %24 {strides = array<i32>} : memref<16x16xf32, #tpu.memory_space<vmem>>, vector<16x16xf32>,
      %c0_20 = arith.constant 0 : index
      %c0_21 = arith.constant 0 : index
      %26 = vector.load %arg6[%c0_20, %c0_21] : memref<16x16xf32, #tpu.memory_space<vmem>>, vector<16x16xf32>
      %27 = arith.addf %26, %4 : vector<16x16xf32>
      %c0_22 = arith.constant 0 : index
      %c0_23 = arith.constant 0 : index
      %28 = vector.load %arg6[%c0_22, %c0_23] : memref<16x16xf32, #tpu.memory_space<vmem>>, vector<16x16xf32>
      tpu.vector_store %arg6[%c0_22, %c0_23], %27 {strides = array<i32>} : memref<16x16xf32, #tpu.memory_space<vmem>>, vector<16x16xf32>,
      %c0_24 = arith.constant 0 : index
      %c0_25 = arith.constant 0 : index
      %29 = vector.load %arg7[%c0_24, %c0_25] : memref<16x1xf32, #tpu.memory_space<vmem>>, vector<16x1xf32>
      %30 = arith.addf %29, %7 : vector<16x1xf32>
      %c0_26 = arith.constant 0 : index
      %c0_27 = arith.constant 0 : index
      %31 = vector.load %arg7[%c0_26, %c0_27] : memref<16x1xf32, #tpu.memory_space<vmem>>, vector<16x1xf32>
      tpu.vector_store %arg7[%c0_26, %c0_27], %30 {strides = array<i32>} : memref<16x1xf32, #tpu.memory_space<vmem>>, vector<16x1xf32>,
      %c0_28 = arith.constant 0 : index
      %c0_29 = arith.constant 0 : index
      %32 = vector.load %arg8[%c0_28, %c0_29] : memref<16x1xf32, #tpu.memory_space<vmem>>, vector<16x1xf32>
      %33 = arith.addf %32, %10 : vector<16x1xf32>
      %c0_30 = arith.constant 0 : index
      %c0_31 = arith.constant 0 : index
      %34 = vector.load %arg8[%c0_30, %c0_31] : memref<16x1xf32, #tpu.memory_space<vmem>>, vector<16x1xf32>
      tpu.vector_store %arg8[%c0_30, %c0_31], %33 {strides = array<i32>} : memref<16x1xf32, #tpu.memory_space<vmem>>, vector<16x1xf32>,
    } else {
    }
    %c0_i32_10 = arith.constant 0 : i32
    %17 = arith.cmpi eq, %arg0, %c0_i32_10 : i32
    %18 = arith.extui %17 : i1 to i32
    %c0_i32_11 = arith.constant 0 : i32
    %19 = arith.cmpi ne, %18, %c0_i32_11 : i32
    scf.if %19 {
      %c0_12 = arith.constant 0 : index
      %c0_13 = arith.constant 0 : index
      %20 = vector.load %arg7[%c0_12, %c0_13] : memref<16x1xf32, #tpu.memory_space<vmem>>, vector<16x1xf32>
      %c0_14 = arith.constant 0 : index
      %c0_15 = arith.constant 0 : index
      %21 = vector.load %arg8[%c0_14, %c0_15] : memref<16x1xf32, #tpu.memory_space<vmem>>, vector<16x1xf32>
      %22 = tpu.transpose %20, [1, 0] : vector<16x1xf32> -> vector<1x16xf32>
      %23 = tpu.transpose %21, [1, 0] : vector<16x1xf32> -> vector<1x16xf32>
      %24 = vector.broadcast %20 : vector<16x1xf32> to vector<16x16xf32>
      %25 = vector.broadcast %22 : vector<1x16xf32> to vector<16x16xf32>
      %26 = arith.addf %24, %25 : vector<16x16xf32>
      %c0_16 = arith.constant 0 : index
      %c0_17 = arith.constant 0 : index
      %27 = vector.load %arg4[%c0_16, %c0_17] : memref<16x16xf32, #tpu.memory_space<vmem>>, vector<16x16xf32>
      %cst_18 = arith.constant 2.000000e+00 : f32
      %28 = vector.broadcast %cst_18 : f32 to vector<16x16xf32>
      %29 = arith.mulf %28, %27 : vector<16x16xf32>
      %30 = arith.subf %26, %29 : vector<16x16xf32>
      %cst_19 = arith.constant 0.000000e+00 : f32
      %31 = vector.broadcast %cst_19 : f32 to vector<16x16xf32>
      %32 = arith.maximumf %30, %31 : vector<16x16xf32>
      %c0_20 = arith.constant 0 : index
      %c0_21 = arith.constant 0 : index
      %33 = vector.load %arg4[%c0_20, %c0_21] : memref<16x16xf32, #tpu.memory_space<vmem>>, vector<16x16xf32>
      tpu.vector_store %arg4[%c0_20, %c0_21], %32 {strides = array<i32>} : memref<16x16xf32, #tpu.memory_space<vmem>>, vector<16x16xf32>,
      %34 = vector.broadcast %21 : vector<16x1xf32> to vector<16x16xf32>
      %35 = vector.broadcast %23 : vector<1x16xf32> to vector<16x16xf32>
      %36 = arith.addf %34, %35 : vector<16x16xf32>
      %c0_22 = arith.constant 0 : index
      %c0_23 = arith.constant 0 : index
      %37 = vector.load %arg5[%c0_22, %c0_23] : memref<16x16xf32, #tpu.memory_space<vmem>>, vector<16x16xf32>
      %cst_24 = arith.constant 2.000000e+00 : f32
      %38 = vector.broadcast %cst_24 : f32 to vector<16x16xf32>
      %39 = arith.mulf %38, %37 : vector<16x16xf32>
      %40 = arith.subf %36, %39 : vector<16x16xf32>
      %cst_25 = arith.constant 0.000000e+00 : f32
      %41 = vector.broadcast %cst_25 : f32 to vector<16x16xf32>
      %42 = arith.maximumf %40, %41 : vector<16x16xf32>
      %c0_26 = arith.constant 0 : index
      %c0_27 = arith.constant 0 : index
      %43 = vector.load %arg5[%c0_26, %c0_27] : memref<16x16xf32, #tpu.memory_space<vmem>>, vector<16x16xf32>
      tpu.vector_store %arg5[%c0_26, %c0_27], %42 {strides = array<i32>} : memref<16x16xf32, #tpu.memory_space<vmem>>, vector<16x16xf32>,
      %44 = vector.broadcast %20 : vector<16x1xf32> to vector<16x16xf32>
      %45 = vector.broadcast %23 : vector<1x16xf32> to vector<16x16xf32>
      %46 = arith.addf %44, %45 : vector<16x16xf32>
      %c0_28 = arith.constant 0 : index
      %c0_29 = arith.constant 0 : index
      %47 = vector.load %arg6[%c0_28, %c0_29] : memref<16x16xf32, #tpu.memory_space<vmem>>, vector<16x16xf32>
      %cst_30 = arith.constant 2.000000e+00 : f32
      %48 = vector.broadcast %cst_30 : f32 to vector<16x16xf32>
      %49 = arith.mulf %48, %47 : vector<16x16xf32>
      %50 = arith.subf %46, %49 : vector<16x16xf32>
      %cst_31 = arith.constant 0.000000e+00 : f32
      %51 = vector.broadcast %cst_31 : f32 to vector<16x16xf32>
      %52 = arith.maximumf %50, %51 : vector<16x16xf32>
      %c0_32 = arith.constant 0 : index
      %c0_33 = arith.constant 0 : index
      %53 = vector.load %arg6[%c0_32, %c0_33] : memref<16x16xf32, #tpu.memory_space<vmem>>, vector<16x16xf32>
      tpu.vector_store %arg6[%c0_32, %c0_33], %52 {strides = array<i32>} : memref<16x16xf32, #tpu.memory_space<vmem>>, vector<16x16xf32>,
      %c0_34 = arith.constant 0 : index
      %c0_35 = arith.constant 0 : index
      %54 = vector.load %arg4[%c0_34, %c0_35] : memref<16x16xf32, #tpu.memory_space<vmem>>, vector<16x16xf32>
      %55 = vector.shape_cast %54 : vector<16x16xf32> to vector<1x16x16xf32>
      %cst_36 = arith.constant dense<0.000000e+00> : vector<1xf32>
      %56 = vector.multi_reduction <add>, %55, %cst_36 [1, 2] : vector<1x16x16xf32> to vector<1xf32>
      %57 = vector.shape_cast %56 : vector<1xf32> to vector<1x1x1xf32>
      %58 = vector.extract %57[0, 0, 0] : f32 from vector<1x1x1xf32>
      %59 = vector.broadcast %58 : f32 to vector<1x1xf32>
      %c0_37 = arith.constant 0 : index
      %c0_38 = arith.constant 0 : index
      %60 = vector.load %arg5[%c0_37, %c0_38] : memref<16x16xf32, #tpu.memory_space<vmem>>, vector<16x16xf32>
      %61 = vector.shape_cast %60 : vector<16x16xf32> to vector<1x16x16xf32>
      %cst_39 = arith.constant dense<0.000000e+00> : vector<1xf32>
      %62 = vector.multi_reduction <add>, %61, %cst_39 [1, 2] : vector<1x16x16xf32> to vector<1xf32>
      %63 = vector.shape_cast %62 : vector<1xf32> to vector<1x1x1xf32>
      %64 = vector.extract %63[0, 0, 0] : f32 from vector<1x1x1xf32>
      %65 = vector.broadcast %64 : f32 to vector<1x1xf32>
      %66 = arith.addf %59, %65 : vector<1x1xf32>
      %c0_40 = arith.constant 0 : index
      %c0_41 = arith.constant 0 : index
      %67 = vector.load %arg6[%c0_40, %c0_41] : memref<16x16xf32, #tpu.memory_space<vmem>>, vector<16x16xf32>
      %68 = vector.shape_cast %67 : vector<16x16xf32> to vector<1x16x16xf32>
      %cst_42 = arith.constant dense<0.000000e+00> : vector<1xf32>
      %69 = vector.multi_reduction <add>, %68, %cst_42 [1, 2] : vector<1x16x16xf32> to vector<1xf32>
      %70 = vector.shape_cast %69 : vector<1xf32> to vector<1x1x1xf32>
      %71 = vector.extract %70[0, 0, 0] : f32 from vector<1x1x1xf32>
      %72 = vector.broadcast %71 : f32 to vector<1x1xf32>
      %cst_43 = arith.constant 2.000000e+00 : f32
      %73 = vector.broadcast %cst_43 : f32 to vector<1x1xf32>
      %74 = arith.mulf %73, %72 : vector<1x1xf32>
      %75 = arith.addf %66, %74 : vector<1x1xf32>
      %cst_44 = arith.constant 2.52016122E-4 : f32
      %76 = vector.broadcast %cst_44 : f32 to vector<1x1xf32>
      %77 = arith.mulf %75, %76 : vector<1x1xf32>
      %cst_45 = arith.constant -1.000000e+00 : f32
      %78 = vector.broadcast %cst_45 : f32 to vector<1x1xf32>
      %79 = arith.divf %78, %77 : vector<1x1xf32>
      %cst_46 = arith.constant 1.000000e+00 : f32
      %80 = vector.broadcast %cst_46 : f32 to vector<1x1xf32>
      %81 = arith.mulf %79, %80 : vector<1x1xf32>
      %cst_47 = arith.constant 5.000000e-01 : f32
      %82 = vector.broadcast %cst_47 : f32 to vector<1x1xf32>
      %83 = arith.mulf %79, %82 : vector<1x1xf32>
      %cst_48 = arith.constant 2.500000e-01 : f32
      %84 = vector.broadcast %cst_48 : f32 to vector<1x1xf32>
      %85 = arith.mulf %79, %84 : vector<1x1xf32>
      %cst_49 = arith.constant 1.250000e-01 : f32
      %86 = vector.broadcast %cst_49 : f32 to vector<1x1xf32>
      %87 = arith.mulf %79, %86 : vector<1x1xf32>
      %cst_50 = arith.constant 6.250000e-02 : f32
      %88 = vector.broadcast %cst_50 : f32 to vector<1x1xf32>
      %89 = arith.mulf %79, %88 : vector<1x1xf32>
      %c0_51 = arith.constant 0 : index
      %c0_52 = arith.constant 0 : index
      %90 = vector.load %arg4[%c0_51, %c0_52] : memref<16x16xf32, #tpu.memory_space<vmem>>, vector<16x16xf32>
      %91 = vector.broadcast %81 : vector<1x1xf32> to vector<16x16xf32>
      %92 = arith.mulf %90, %91 : vector<16x16xf32>
      %93 = math.exp %92 : vector<16x16xf32>
      %94 = vector.broadcast %83 : vector<1x1xf32> to vector<16x16xf32>
      %95 = arith.mulf %90, %94 : vector<16x16xf32>
      %96 = math.exp %95 : vector<16x16xf32>
      %97 = arith.addf %93, %96 : vector<16x16xf32>
      %98 = vector.broadcast %85 : vector<1x1xf32> to vector<16x16xf32>
      %99 = arith.mulf %90, %98 : vector<16x16xf32>
      %100 = math.exp %99 : vector<16x16xf32>
      %101 = arith.addf %97, %100 : vector<16x16xf32>
      %102 = vector.broadcast %87 : vector<1x1xf32> to vector<16x16xf32>
      %103 = arith.mulf %90, %102 : vector<16x16xf32>
      %104 = math.exp %103 : vector<16x16xf32>
      %105 = arith.addf %101, %104 : vector<16x16xf32>
      %106 = vector.broadcast %89 : vector<1x1xf32> to vector<16x16xf32>
      %107 = arith.mulf %90, %106 : vector<16x16xf32>
      %108 = math.exp %107 : vector<16x16xf32>
      %109 = arith.addf %105, %108 : vector<16x16xf32>
      %110 = vector.shape_cast %109 : vector<16x16xf32> to vector<1x16x16xf32>
      %cst_53 = arith.constant dense<0.000000e+00> : vector<1xf32>
      %111 = vector.multi_reduction <add>, %110, %cst_53 [1, 2] : vector<1x16x16xf32> to vector<1xf32>
      %112 = vector.shape_cast %111 : vector<1xf32> to vector<1x1x1xf32>
      %113 = vector.extract %112[0, 0, 0] : f32 from vector<1x1x1xf32>
      %114 = vector.broadcast %113 : f32 to vector<1x1xf32>
      %c0_54 = arith.constant 0 : index
      %c0_55 = arith.constant 0 : index
      %115 = vector.load %arg5[%c0_54, %c0_55] : memref<16x16xf32, #tpu.memory_space<vmem>>, vector<16x16xf32>
      %116 = vector.broadcast %81 : vector<1x1xf32> to vector<16x16xf32>
      %117 = arith.mulf %115, %116 : vector<16x16xf32>
      %118 = math.exp %117 : vector<16x16xf32>
      %119 = vector.broadcast %83 : vector<1x1xf32> to vector<16x16xf32>
      %120 = arith.mulf %115, %119 : vector<16x16xf32>
      %121 = math.exp %120 : vector<16x16xf32>
      %122 = arith.addf %118, %121 : vector<16x16xf32>
      %123 = vector.broadcast %85 : vector<1x1xf32> to vector<16x16xf32>
      %124 = arith.mulf %115, %123 : vector<16x16xf32>
      %125 = math.exp %124 : vector<16x16xf32>
      %126 = arith.addf %122, %125 : vector<16x16xf32>
      %127 = vector.broadcast %87 : vector<1x1xf32> to vector<16x16xf32>
      %128 = arith.mulf %115, %127 : vector<16x16xf32>
      %129 = math.exp %128 : vector<16x16xf32>
      %130 = arith.addf %126, %129 : vector<16x16xf32>
      %131 = vector.broadcast %89 : vector<1x1xf32> to vector<16x16xf32>
      %132 = arith.mulf %115, %131 : vector<16x16xf32>
      %133 = math.exp %132 : vector<16x16xf32>
      %134 = arith.addf %130, %133 : vector<16x16xf32>
      %135 = vector.shape_cast %134 : vector<16x16xf32> to vector<1x16x16xf32>
      %cst_56 = arith.constant dense<0.000000e+00> : vector<1xf32>
      %136 = vector.multi_reduction <add>, %135, %cst_56 [1, 2] : vector<1x16x16xf32> to vector<1xf32>
      %137 = vector.shape_cast %136 : vector<1xf32> to vector<1x1x1xf32>
      %138 = vector.extract %137[0, 0, 0] : f32 from vector<1x1x1xf32>
      %139 = vector.broadcast %138 : f32 to vector<1x1xf32>
      %140 = arith.addf %114, %139 : vector<1x1xf32>
      %c0_57 = arith.constant 0 : index
      %c0_58 = arith.constant 0 : index
      %141 = vector.load %arg6[%c0_57, %c0_58] : memref<16x16xf32, #tpu.memory_space<vmem>>, vector<16x16xf32>
      %142 = vector.broadcast %81 : vector<1x1xf32> to vector<16x16xf32>
      %143 = arith.mulf %141, %142 : vector<16x16xf32>
      %144 = math.exp %143 : vector<16x16xf32>
      %145 = vector.broadcast %83 : vector<1x1xf32> to vector<16x16xf32>
      %146 = arith.mulf %141, %145 : vector<16x16xf32>
      %147 = math.exp %146 : vector<16x16xf32>
      %148 = arith.addf %144, %147 : vector<16x16xf32>
      %149 = vector.broadcast %85 : vector<1x1xf32> to vector<16x16xf32>
      %150 = arith.mulf %141, %149 : vector<16x16xf32>
      %151 = math.exp %150 : vector<16x16xf32>
      %152 = arith.addf %148, %151 : vector<16x16xf32>
      %153 = vector.broadcast %87 : vector<1x1xf32> to vector<16x16xf32>
      %154 = arith.mulf %141, %153 : vector<16x16xf32>
      %155 = math.exp %154 : vector<16x16xf32>
      %156 = arith.addf %152, %155 : vector<16x16xf32>
      %157 = vector.broadcast %89 : vector<1x1xf32> to vector<16x16xf32>
      %158 = arith.mulf %141, %157 : vector<16x16xf32>
      %159 = math.exp %158 : vector<16x16xf32>
      %160 = arith.addf %156, %159 : vector<16x16xf32>
      %161 = vector.shape_cast %160 : vector<16x16xf32> to vector<1x16x16xf32>
      %cst_59 = arith.constant dense<0.000000e+00> : vector<1xf32>
      %162 = vector.multi_reduction <add>, %161, %cst_59 [1, 2] : vector<1x16x16xf32> to vector<1xf32>
      %163 = vector.shape_cast %162 : vector<1xf32> to vector<1x1x1xf32>
      %164 = vector.extract %163[0, 0, 0] : f32 from vector<1x1x1xf32>
      %165 = vector.broadcast %164 : f32 to vector<1x1xf32>
      %cst_60 = arith.constant 2.000000e+00 : f32
      %166 = vector.broadcast %cst_60 : f32 to vector<1x1xf32>
      %167 = arith.mulf %166, %165 : vector<1x1xf32>
      %168 = arith.subf %140, %167 : vector<1x1xf32>
      %cst_61 = arith.constant 3.906250e-03 : f32
      %169 = vector.broadcast %cst_61 : f32 to vector<1x1xf32>
      %170 = arith.mulf %168, %169 : vector<1x1xf32>
      %c0_62 = arith.constant 0 : index
      %c0_63 = arith.constant 0 : index
      %171 = vector.load %arg3[%c0_62, %c0_63] : memref<1x1xf32, #tpu.memory_space<vmem>>, vector<1x1xf32>
      tpu.vector_store %arg3[%c0_62, %c0_63], %170 {strides = array<i32>} : memref<1x1xf32, #tpu.memory_space<vmem>>, vector<1x1xf32>,
    } else {
    }
    return
  }
  func.func @transform_0(%arg0: i32) -> (i32, i32) {
    %c0_i32 = arith.constant 0 : i32
    %c0_i32_0 = arith.constant 0 : i32
    return %c0_i32, %arg0 : i32, i32
  }
  func.func @transform_1(%arg0: i32) -> (i32, i32) {
    %c0_i32 = arith.constant 0 : i32
    %c0_i32_0 = arith.constant 0 : i32
    return %c0_i32, %arg0 : i32, i32
  }
  func.func @transform_2(%arg0: i32) -> (i32, i32) {
    %c0_i32 = arith.constant 0 : i32
    %c0_i32_0 = arith.constant 0 : i32
    %c0_i32_1 = arith.constant 0 : i32
    return %c0_i32, %c0_i32_0 : i32, i32
  }
}

</mosaic_0001>

<bundles_post_ra>
// kernel: tpu_custom_call.1
= control target key start
LH: loop header
LB: loop body
LE: loop exit
PB: predicated region body
PF: predicated region fallthrough
CT: control target
= control target key end

     0   :  { %7 = vsyncpa [#allocation8], 0  ;;  %s1072_s0 = inlined_call_operand.hbm [shape: f32[16,128], index: 0, kind: input, shape index: {}]   ;;  %s1073_s1 = inlined_call_operand.hbm [shape: f32[16,128], index: 1, kind: input, shape index: {}]   ;;  %s1074_s2 = inlined_call_operand.hbm [shape: f32[1,1], index: 2, kind: output, shape index: {}]  }
   0x1   :  { %8 = vsyncpa [#allocation11], 0 }
   0x2   :  { %9 = vsyncpa [#allocation9], 0  ;;  %s899_s9 = smov [#allocation7]   ;;  %s827_s13 = scalar_lea.hbm %s1072_s0, 256 }
   0x3   :  { %s15_s10 = sshll.u32 %s899_s9, 4  ;;  %p828_p0 = scmp.ne.s32.totalorder %s1072_s0, %s827_s13  ;;  %s16_s10 = int_to_ptr.vmem [resolvable:$true] %s15_s10 }
   0x4   :  { %p831_p1 = scmp.lt.u32.totalorder %s827_s13, %s1072_s0 }
   0x6   :  { %p833_p2 = pnand %p831_p1, %p828_p0 }
   0x8   :  { %836 = shalt.err (!%p833_p2)
}
   0x9   :  { %s837_s18 = scalar_lea.vmem %s16_s10, 256  ;;  %p842_p4 = scmp.lt.s32.totalorder %s16_s10, %s16_s10 }
   0xa   :  { %p838_p3 = scmp.ne.s32.totalorder %s16_s10, %s837_s18  ;;  %p843_p5 = scmp.lt.s32.totalorder %s837_s18, %s837_s18 }
   0xc   :  { %p844_p6 = por %p843_p5, %p842_p4 }
   0xe   :  { %p845_p7 = pnand %p844_p6, %p838_p3 }
  0x10   :  { %848 = shalt.err (!%p845_p7)
}
  0x11   :  { %s900_s19 = smov 128   ;;  %s901_s20 = smov 8  }
  0x12   :  { %21 = dma.hbm_to_vmem [thread:$0]  %s1072_s0, 256, %s16_s10, [#allocation8], %s900_s19, %s900_s19, %s901_s20  }
  0x13   :  { %s902_s23 = smov [#allocation10]   ;;  %s849_s27 = scalar_lea.hbm %s1073_s1, 256 }
  0x14   :  { %s27_s24 = sshll.u32 %s902_s23, 4  ;;  %p850_p8 = scmp.ne.s32.totalorder %s1073_s1, %s849_s27  ;;  %s28_s24 = int_to_ptr.vmem [resolvable:$true] %s27_s24 }
  0x15   :  { %p853_p9 = scmp.lt.u32.totalorder %s849_s27, %s1073_s1 }
  0x17   :  { %p855_p10 = pnand %p853_p9, %p850_p8 }
  0x19   :  { %858 = shalt.err (!%p855_p10)
}
  0x1a   :  { %s859_s4 = scalar_lea.vmem %s28_s24, 256  ;;  %p864_p12 = scmp.lt.s32.totalorder %s28_s24, %s28_s24 }
  0x1b   :  { %p860_p11 = scmp.ne.s32.totalorder %s28_s24, %s859_s4  ;;  %p865_p13 = scmp.lt.s32.totalorder %s859_s4, %s859_s4 }
  0x1d   :  { %p866_p0 = por %p865_p13, %p864_p12 }
  0x1f   :  { %p867_p1 = pnand %p866_p0, %p860_p11 }
  0x21   :  { %870 = shalt.err (!%p867_p1)
}
  0x22   :  { %33 = dma.hbm_to_vmem [thread:$0]  %s1073_s1, 256, %s28_s24, [#allocation11], %s900_s19, %s900_s19, %s901_s20  }
  0x23   :  { %893 = dma.done.wait [#allocation8], 256  }
  0x24   :  { %894 = vsyncadd [#allocation8], 4294967040 }
  0x25   :  { %895 = dma.done.wait [#allocation11], 256  }
  0x26   :  { %896 = vsyncadd [#allocation11], 4294967040  ;;  %v40_v0 = vld [vmem:[#allocation7] sm:$0xff]  ;;  %v41_v1 = vld [vmem:[#allocation7 + $0x8] sm:$0xff]  ;;  %v903_v10 = vmov 0   ;;  %vm292_vm0 = vcmask 7168   ;;  %v414_v25 = vlaneseq }
  0x27   :  { %v42_v2 = vld [vmem:[#allocation10] sm:$0xff]  ;;  %v269_v3 = vmul.f32 %v40_v0, %v40_v0  ;;  %v43_v5 = vld [vmem:[#allocation10 + $0x8] sm:$0xff]  ;;  %v732_v6 = vpack.c.bf16 %v41_v1, %v40_v0  ;;  %715 = vmatprep.mubr.f32.mxu0 %v40_v0  ;;  %v270_v8 = vmul.f32 %v41_v1, %v41_v1  ;;  %763 = vset.pattern.permute.xlu0 %v903_v10  ;;  %vm285_vm1 = vcmask 130048   ;;  %s904_s11 = smov [#allocation12]  }
  0x28   :  { %v275_v4 = vmul.f32 %v42_v2, %v42_v2  ;;  %v736_v7 = vpack.c.bf16 %v43_v5, %v42_v2  ;;  %722 = vmatprep.mubr.f32.mxu1 %v42_v2  ;;  %v276_v9 = vmul.f32 %v43_v5, %v43_v5  ;;  %764 = vset.pattern.permute.xlu1 %v903_v10  ;;  %v415_v27 = vshrl.u32 %v414_v25, 7  ;;  %s689_s12 = sshll.u32 %s904_s11, 4  ;;  %s690_s12 = int_to_ptr.vmem [resolvable:$true] %s689_s12 }
  0x29   :  { %271 = vadd.xlane.f32.xlu0 %v269_v3  ;;  %733 = vmatprep.subr.bf16.mxu0 %v732_v6  ;;  %vm681_vm2 = vcmask 0   ;;  %s871_s13 = scalar_lea.vmem %s690_s12, 16  ;;  %s875_s14 = scalar_lea.vmem %s690_s12, 32 }
  0x2a   :  { %277 = vadd.xlane.f32.xlu1 %v275_v4  ;;  %737 = vmatprep.subr.bf16.mxu1 %v736_v7  ;;  %v416_v30 = vsub.s32 0, %v415_v27  ;;  %p872_p2 = scmp.ne.s32.totalorder %s690_s12, %s871_s13  ;;  %p876_p3 = scmp.lt.s32.totalorder %s690_s12, %s690_s12 }
  0x2b   :  { %735 = vmatpush3.bf16.xpose.msra.mxu0 %v732_v6  ;;  %739 = vmatpush3.bf16.xpose.msra.mxu1 %v736_v7  ;;  %p877_p4 = scmp.lt.s32.totalorder %s875_s14, %s871_s13 }
  0x2c   :  { %741 = vmatprep.subr.bf16.mxu0 %v736_v7 }
  0x2d   :  { %273 = vadd.xlane.f32.xlu0 %v270_v8  ;;  %p878_p5 = por %p877_p4, %p876_p3 }
  0x2e   :  { %279 = vadd.xlane.f32.xlu1 %v276_v9 }
  0x2f   :  { %p879_p6 = pnand %p878_p5, %p872_p2 }
  0x32   :  { %716 = vmatmul.mubr.f32.vlgmr.msra.gmra.mrb[0].mxu0 %v41_v1  ;;  %723 = vmatmul.mubr.f32.vlgmr.msra.gmra.mrb[0].mxu1 %v43_v5 }
  0x33   :  { %743 = vmatpush3.bf16.xpose.msra.mxu0 %v736_v7  ;;  %729 = vmatprep.mubr.f32.mxu0 %v40_v0 }
  0x3a   :  { %730 = vmatmul.mubr.f32.vlgmr.msra.gmra.mrb[2].mxu0 %v41_v1 }
  0xb6   :  { %v272_v11 = vpop.xlane.xlu0 %271 }
  0xb7   :  { %v278_v12 = vpop.xlane.xlu1 %277  ;;  %293 = vst.msk [vmem:[#allocation5] sm:$0xff] %vm292_vm0, %v272_v11 }
  0xb8   :  { %295 = vst.msk [vmem:[#allocation6] sm:$0xff] %vm292_vm0, %v278_v12 }
  0xba   :  { %v274_v13 = vpop.xlane.xlu0 %273 }
  0xbb   :  { %v280_v14 = vpop.xlane.xlu1 %279  ;;  %294 = vst.msk [vmem:[#allocation5 + $0x8] sm:$0xff] %vm292_vm0, %v274_v13 }
  0xbc   :  { %296 = vst.msk [vmem:[#allocation6 + $0x8] sm:$0xff] %vm292_vm0, %v280_v14 }
  0xbe   :  { %v336_v15 = vld [vmem:[#allocation5] sm:$0xff] }
  0xbf   :  { %406 = vperm.xlu0 %763, %v336_v15   ;;  %v338_v17 = vld [vmem:[#allocation6] sm:$0xff] }
  0xc2   :  { %v337_v16 = vld [vmem:[#allocation5 + $0x8] sm:$0xff] }
  0xc3   :  { %411 = vperm.xlu1 %764, %v337_v16   ;;  %v339_v18 = vld [vmem:[#allocation6 + $0x8] sm:$0xff] }
  0xc7   :  { %433 = vperm.xlu1 %764, %v338_v17  }
  0xcb   :  { %438 = vperm.xlu1 %764, %v339_v18  }
  0xdd   :  { %372 = vxpose.xlu0.b32.start [1/2] (short) (narrow) %v338_v17, 8 }
  0xe1   :  { %373 = vxpose.xlu0.b32.end [2/2] (short) (narrow) %v339_v18, 8 }
  0xf4   :  { %340 = vxpose.xlu1.b32.start [1/2] (short) (narrow) %v336_v15, 8 }
  0xf8   :  { %341 = vxpose.xlu1.b32.end [2/2] (short) (narrow) %v337_v16, 8 }
 0x105   :  { %v717_v19 = vpop.f32.mrb[0].mxu0  ;;  %v724_v20 = vpop.f32.mrb[0].mxu1 }
 0x106   :  { %287 = vst.msk [vmem:[#allocation2 + $0x8] sm:$0xff] %vm285_vm1, %v717_v19  ;;  %v110_v21 = vpop.f32.mrb[1].mxu0  ;;  %289 = vst.msk [vmem:[#allocation3 + $0x8] sm:$0xff] %vm285_vm1, %v724_v20  ;;  %v185_v22 = vpop.f32.mrb[1].mxu1 }
 0x107   :  { %286 = vst.msk [vmem:[#allocation2] sm:$0xff] %vm285_vm1, %v110_v21  ;;  %288 = vst.msk [vmem:[#allocation3] sm:$0xff] %vm285_vm1, %v185_v22 }
 0x10d   :  { %v731_v23 = vpop.f32.mrb[2].mxu0  ;;  %v448_v31 = vld [vmem:[#allocation3 + $0x8] sm:$0xff]  ;;  %v421_v61 = vld [vmem:[#allocation2 + $0x8] sm:$0xff] }
 0x10e   :  { %291 = vst.msk [vmem:[#allocation4 + $0x8] sm:$0xff] %vm285_vm1, %v731_v23  ;;  %v260_v24 = vpop.f32.mrb[3].mxu0  ;;  %v447_v32 = vld [vmem:[#allocation3] sm:$0xff]  ;;  %v450_v35 = vmul.f32 2.0, %v448_v31  ;;  %v420_v60 = vld [vmem:[#allocation2] sm:$0xff]  ;;  %v423_v2 = vmul.f32 2.0, %v421_v61 }
 0x10f   :  { %290 = vst.msk [vmem:[#allocation4] sm:$0xff] %vm285_vm1, %v260_v24  ;;  %v449_v37 = vmul.f32 2.0, %v447_v32  ;;  %v422_v1 = vmul.f32 2.0, %v420_v60 }
 0x115   :  { %v460_v34 = vld [vmem:[#allocation4 + $0x8] sm:$0xff] }
 0x116   :  { %v459_v33 = vld [vmem:[#allocation4] sm:$0xff]  ;;  %v462_v40 = vmul.f32 2.0, %v460_v34 }
 0x117   :  { %v461_v39 = vmul.f32 2.0, %v459_v33 }
 0x13e   :  { %v407_v28 = vpop.permute.xlu0 %406 }
 0x142   :  { %v412_v26 = vpop.permute.xlu1 %411 }
 0x146   :  { %v434_v29 = vpop.permute.xlu1 %433 }
 0x14a   :  { %v439_v41 = vpop.permute.xlu1 %438 }
 0x15d   :  { %v388_v36 = vpop.trf.xlu0 }
 0x15e   :  { %v444_v38 = vrot.slane %v388_v36, %v416_v30 }
 0x160   :  { %v445_v42 = vadd.f32 %v444_v38, %v434_v29  ;;  %v446_v43 = vadd.f32 %v444_v38, %v439_v41  ;;  %v457_v44 = vadd.f32 %v444_v38, %v407_v28  ;;  %v458_v45 = vadd.f32 %v444_v38, %v412_v26 }
 0x162   :  { %v451_v46 = vsub.f32 %v445_v42, %v449_v37  ;;  %v452_v47 = vsub.f32 %v446_v43, %v450_v35  ;;  %v463_v48 = vsub.f32 %v457_v44, %v461_v39  ;;  %v464_v49 = vsub.f32 %v458_v45, %v462_v40 }
 0x164   :  { %v453_v50 = vmax.f32 %v451_v46, 0.0  ;;  %v454_v51 = vmax.f32 %v452_v47, 0.0  ;;  %v465_v52 = vmax.f32 %v463_v48, 0.0  ;;  %v466_v53 = vmax.f32 %v464_v49, 0.0 }
 0x166   :  { %455 = vst.msk [vmem:[#allocation3] sm:$0xff] %vm285_vm1, %v453_v50  ;;  %456 = vst.msk [vmem:[#allocation3 + $0x8] sm:$0xff] %vm285_vm1, %v454_v51 }
 0x167   :  { %467 = vst.msk [vmem:[#allocation4] sm:$0xff] %vm285_vm1, %v465_v52  ;;  %468 = vst.msk [vmem:[#allocation4 + $0x8] sm:$0xff] %vm285_vm1, %v466_v53 }
 0x16d   :  { %v954_v54 = vld [vmem:[#allocation3] sm:$0xff]  ;;  %v956_v55 = vld [vmem:[#allocation3 + $0x8] sm:$0xff] }
 0x16e   :  { %v486_v56 = vsel %vm285_vm1, %v954_v54, 0.0  ;;  %v487_v57 = vsel %vm285_vm1, %v956_v55, 0.0  ;;  %v964_v7 = vld [vmem:[#allocation4] sm:$0xff]  ;;  %v970_v10 = vld [vmem:[#allocation4 + $0x8] sm:$0xff] }
 0x16f   :  { %v488_v58 = vadd.f32 %v487_v57, %v486_v56  ;;  %v502_v14 = vsel %vm285_vm1, %v964_v7, 0.0  ;;  %v503_v15 = vsel %vm285_vm1, %v970_v10, 0.0 }
 0x170   :  { %v504_v16 = vadd.f32 %v503_v15, %v502_v14 }
 0x171   :  { %489 = vadd.xlane.f32.xlu0 %v488_v58 }
 0x174   :  { %v356_v59 = vpop.trf.xlu1 }
 0x175   :  { %v417_v62 = vrot.slane %v356_v59, %v416_v30 }
 0x177   :  { %v418_v63 = vadd.f32 %v417_v62, %v407_v28  ;;  %v419_v0 = vadd.f32 %v417_v62, %v412_v26 }
 0x179   :  { %v424_v3 = vsub.f32 %v418_v63, %v422_v1  ;;  %v425_v4 = vsub.f32 %v419_v0, %v423_v2 }
 0x17b   :  { %v426_v5 = vmax.f32 %v424_v3, 0.0  ;;  %v427_v6 = vmax.f32 %v425_v4, 0.0 }
 0x17d   :  { %429 = vst.msk [vmem:[#allocation2] sm:$0xff] %vm285_vm1, %v426_v5  ;;  %430 = vst.msk [vmem:[#allocation2 + $0x8] sm:$0xff] %vm285_vm1, %v427_v6 }
 0x184   :  { %v966_v8 = vld [vmem:[#allocation2] sm:$0xff]  ;;  %v968_v9 = vld [vmem:[#allocation2 + $0x8] sm:$0xff] }
 0x185   :  { %v471_v11 = vsel %vm285_vm1, %v966_v8, 0.0  ;;  %v472_v12 = vsel %vm285_vm1, %v968_v9, 0.0 }
 0x186   :  { %v473_v13 = vadd.f32 %v472_v12, %v471_v11 }
 0x188   :  { %474 = vadd.xlane.f32.xlu1 %v473_v13 }
 0x18c   :  { %505 = vadd.xlane.f32.xlu1 %v504_v16 }
 0x1fe   :  { %v490_v17 = vpop.xlane.xlu0 %489 }
 0x1ff   :  { %v491_v18 = vrot.slane %v490_v17, 4 }
 0x201   :  { %v492_v19 = vadd.f32 %v491_v18, %v490_v17 }
 0x203   :  { %v493_v20 = vrot.slane %v492_v19, 2 }
 0x205   :  { %v494_v24 = vadd.f32 %v493_v20, %v492_v19 }
 0x207   :  { %v495_v30 = vrot.slane %v494_v24, 1 }
 0x209   :  { %v496_v35 = vadd.f32 %v495_v30, %v494_v24 }
 0x215   :  { %v475_v21 = vpop.xlane.xlu1 %474 }
 0x216   :  { %v476_v22 = vrot.slane %v475_v21, 4 }
 0x218   :  { %v477_v23 = vadd.f32 %v476_v22, %v475_v21 }
 0x219   :  { %v506_v25 = vpop.xlane.xlu1 %505 }
 0x21a   :  { %v478_v26 = vrot.slane %v477_v23, 2  ;;  %v507_v27 = vrot.slane %v506_v25, 4 }
 0x21c   :  { %v508_v28 = vadd.f32 %v507_v27, %v506_v25  ;;  %v479_v29 = vadd.f32 %v478_v26, %v477_v23 }
 0x21e   :  { %v509_v31 = vrot.slane %v508_v28, 2  ;;  %v480_v32 = vrot.slane %v479_v29, 1 }
 0x220   :  { %v481_v33 = vadd.f32 %v480_v32, %v479_v29  ;;  %v510_v34 = vadd.f32 %v509_v31, %v508_v28 }
 0x222   :  { %744 = vpush %v481_v33  ;;  %v511_v36 = vrot.slane %v510_v34, 1 }
 0x223   :  { %746 = vpush %v496_v35 }
 0x224   :  { %v512_v37 = vadd.f32 %v511_v36, %v510_v34 }
 0x226   :  { %748 = vpush %v512_v37 }
 0x253   :  { %s745_s1 = spop %744 }
 0x254   :  { %s747_s6 = spop %746  ;;  %v483_v38 = vstv %s745_s1 }
 0x255   :  { %v498_v39 = vstv %s747_s6 }
 0x256   :  { %v499_v41 = vadd.f32 %v498_v39, %v483_v38 }
 0x257   :  { %s749_s7 = spop %748 }
 0x258   :  { %v514_v40 = vstv %s749_s7 }
 0x259   :  { %v515_v42 = vmul.f32 2.0, %v514_v40 }
 0x25b   :  { %v516_v43 = vadd.f32 %v515_v42, %v499_v41 }
 0x25d   :  { %v517_v44 = vmul.f32 0.00025201612, %v516_v43 }
 0x25f   :  { %765 = vrcp.f32 %v517_v44 }
 0x269   :  { %v766_v45 = vpop.eup %765 }
 0x26a   :  { %v980_v46 = vmul.f32 -1.0, %v766_v45 }
 0x26c   :  { %v983_v47 = vmul.f32 0.5, %v980_v46  ;;  %v986_v48 = vmul.f32 0.25, %v980_v46  ;;  %v989_v49 = vmul.f32 0.125, %v980_v46  ;;  %v992_v50 = vmul.f32 0.0625, %v980_v46 }
 0x26d   :  { %v524_v51 = vmul.f32 %v980_v46, %v966_v8  ;;  %v525_v52 = vmul.f32 %v980_v46, %v968_v9  ;;  %v575_v6 = vmul.f32 %v980_v46, %v954_v54  ;;  %v576_v12 = vmul.f32 %v980_v46, %v956_v55 }
 0x26e   :  { %v530_v53 = vmul.f32 %v983_v47, %v966_v8  ;;  %v531_v56 = vmul.f32 %v983_v47, %v968_v9  ;;  %v538_v57 = vmul.f32 %v986_v48, %v966_v8  ;;  %v539_v58 = vmul.f32 %v986_v48, %v968_v9 }
 0x26f   :  { %v526_v59 = vmul.f32 1.442695, %v524_v51  ;;  %v528_v60 = vmul.f32 1.442695, %v525_v52  ;;  %v546_v61 = vmul.f32 %v989_v49, %v966_v8  ;;  %v547_v0 = vmul.f32 %v989_v49, %v968_v9 }
 0x270   :  { %v532_v62 = vmul.f32 1.442695, %v530_v53  ;;  %v534_v63 = vmul.f32 1.442695, %v531_v56  ;;  %v540_v1 = vmul.f32 1.442695, %v538_v57  ;;  %v554_v2 = vmul.f32 %v992_v50, %v966_v8 }
 0x271   :  { %767 = vpow2.f32 %v526_v59  ;;  %v542_v3 = vmul.f32 1.442695, %v539_v58  ;;  %v555_v4 = vmul.f32 %v992_v50, %v968_v9  ;;  %v548_v5 = vmul.f32 1.442695, %v546_v61 }
 0x272   :  { %769 = vpow2.f32 %v528_v60  ;;  %v550_v11 = vmul.f32 1.442695, %v547_v0  ;;  %v556_v13 = vmul.f32 1.442695, %v554_v2  ;;  %v581_v8 = vmul.f32 %v983_v47, %v954_v54 }
 0x273   :  { %771 = vpow2.f32 %v532_v62  ;;  %v558_v14 = vmul.f32 1.442695, %v555_v4  ;;  %v582_v9 = vmul.f32 %v983_v47, %v956_v55  ;;  %v577_v15 = vmul.f32 1.442695, %v575_v6 }
 0x274   :  { %773 = vpow2.f32 %v534_v63  ;;  %v589_v16 = vmul.f32 %v986_v48, %v954_v54  ;;  %v579_v17 = vmul.f32 1.442695, %v576_v12  ;;  %v590_v18 = vmul.f32 %v986_v48, %v956_v55 }
 0x275   :  { %775 = vpow2.f32 %v540_v1  ;;  %v583_v19 = vmul.f32 1.442695, %v581_v8  ;;  %v597_v20 = vmul.f32 %v989_v49, %v954_v54  ;;  %v585_v21 = vmul.f32 1.442695, %v582_v9 }
 0x276   :  { %777 = vpow2.f32 %v542_v3  ;;  %v598_v22 = vmul.f32 %v989_v49, %v956_v55  ;;  %v591_v24 = vmul.f32 1.442695, %v589_v16  ;;  %v605_v25 = vmul.f32 %v992_v50, %v954_v54 }
 0x277   :  { %779 = vpow2.f32 %v548_v5  ;;  %v593_v27 = vmul.f32 1.442695, %v590_v18  ;;  %v606_v28 = vmul.f32 %v992_v50, %v956_v55  ;;  %v599_v30 = vmul.f32 1.442695, %v597_v20 }
 0x278   :  { %781 = vpow2.f32 %v550_v11  ;;  %v627_v31 = vmul.f32 %v980_v46, %v964_v7  ;;  %v601_v34 = vmul.f32 1.442695, %v598_v22  ;;  %v628_v35 = vmul.f32 %v980_v46, %v970_v10 }
 0x279   :  { %783 = vpow2.f32 %v556_v13  ;;  %v607_v37 = vmul.f32 1.442695, %v605_v25  ;;  %v633_v55 = vmul.f32 %v983_v47, %v964_v7  ;;  %v609_v40 = vmul.f32 1.442695, %v606_v28 }
 0x27a   :  { %785 = vpow2.f32 %v558_v14  ;;  %v634_v41 = vmul.f32 %v983_v47, %v970_v10  ;;  %v629_v44 = vmul.f32 1.442695, %v627_v31  ;;  %v641_v45 = vmul.f32 %v986_v48, %v964_v7 }
 0x27b   :  { %v768_v23 = vpop.eup %767  ;;  %787 = vpow2.f32 %v577_v15  ;;  %v631_v52 = vmul.f32 1.442695, %v628_v35  ;;  %v642_v53 = vmul.f32 %v986_v48, %v970_v10  ;;  %v635_v58 = vmul.f32 1.442695, %v633_v55 }
 0x27c   :  { %v770_v26 = vpop.eup %769  ;;  %789 = vpow2.f32 %v579_v17  ;;  %v649_v47 = vmul.f32 %v989_v49, %v964_v7  ;;  %v637_v61 = vmul.f32 1.442695, %v634_v41  ;;  %v650_v62 = vmul.f32 %v989_v49, %v970_v10 }
 0x27d   :  { %v772_v29 = vpop.eup %771  ;;  %791 = vpow2.f32 %v583_v19  ;;  %v643_v1 = vmul.f32 1.442695, %v641_v45  ;;  %v657_v48 = vmul.f32 %v992_v50, %v964_v7  ;;  %v645_v4 = vmul.f32 1.442695, %v642_v53 }
 0x27e   :  { %v774_v32 = vpop.eup %773  ;;  %v536_v33 = vadd.f32 %v772_v29, %v768_v23  ;;  %793 = vpow2.f32 %v585_v21  ;;  %v658_v5 = vmul.f32 %v992_v50, %v970_v10  ;;  %v651_v49 = vmul.f32 1.442695, %v649_v47 }
 0x27f   :  { %v776_v54 = vpop.eup %775  ;;  %v537_v36 = vadd.f32 %v774_v32, %v770_v26  ;;  %795 = vpow2.f32 %v591_v24  ;;  %v653_v14 = vmul.f32 1.442695, %v650_v62  ;;  %v659_v15 = vmul.f32 1.442695, %v657_v48 }
 0x280   :  { %v778_v38 = vpop.eup %777  ;;  %v544_v39 = vadd.f32 %v776_v54, %v536_v33  ;;  %797 = vpow2.f32 %v593_v27  ;;  %v661_v18 = vmul.f32 1.442695, %v658_v5 }
 0x281   :  { %v780_v42 = vpop.eup %779  ;;  %v545_v43 = vadd.f32 %v778_v38, %v537_v36  ;;  %799 = vpow2.f32 %v599_v30 }
 0x282   :  { %v782_v46 = vpop.eup %781  ;;  %v552_v51 = vadd.f32 %v780_v42, %v544_v39  ;;  %801 = vpow2.f32 %v601_v34 }
 0x283   :  { %v784_v56 = vpop.eup %783  ;;  %v553_v57 = vadd.f32 %v782_v46, %v545_v43  ;;  %803 = vpow2.f32 %v607_v37 }
 0x284   :  { %v786_v59 = vpop.eup %785  ;;  %v560_v60 = vadd.f32 %v784_v56, %v552_v51  ;;  %805 = vpow2.f32 %v609_v40 }
 0x285   :  { %v788_v63 = vpop.eup %787  ;;  %v561_v0 = vadd.f32 %v786_v59, %v553_v57  ;;  %807 = vpow2.f32 %v629_v44 }
 0x286   :  { %v790_v2 = vpop.eup %789  ;;  %v562_v3 = vsel %vm285_vm1, %v560_v60, 0.0  ;;  %809 = vpow2.f32 %v631_v52 }
 0x287   :  { %v792_v6 = vpop.eup %791  ;;  %v563_v11 = vsel %vm285_vm1, %v561_v0, 0.0  ;;  %811 = vpow2.f32 %v635_v58 }
 0x288   :  { %v794_v12 = vpop.eup %793  ;;  %v564_v13 = vadd.f32 %v563_v11, %v562_v3  ;;  %v587_v8 = vadd.f32 %v792_v6, %v788_v63  ;;  %813 = vpow2.f32 %v637_v61 }
 0x289   :  { %v796_v9 = vpop.eup %795  ;;  %v588_v7 = vadd.f32 %v794_v12, %v790_v2  ;;  %815 = vpow2.f32 %v643_v1 }
 0x28a   :  { %v798_v16 = vpop.eup %797  ;;  %565 = vadd.xlane.f32.xlu1 %v564_v13  ;;  %v595_v17 = vadd.f32 %v796_v9, %v587_v8  ;;  %817 = vpow2.f32 %v645_v4 }
 0x28b   :  { %v800_v10 = vpop.eup %799  ;;  %v596_v50 = vadd.f32 %v798_v16, %v588_v7  ;;  %819 = vpow2.f32 %v651_v49 }
 0x28c   :  { %v802_v19 = vpop.eup %801  ;;  %v603_v20 = vadd.f32 %v800_v10, %v595_v17  ;;  %821 = vpow2.f32 %v653_v14 }
 0x28d   :  { %v804_v21 = vpop.eup %803  ;;  %v604_v22 = vadd.f32 %v802_v19, %v596_v50  ;;  %823 = vpow2.f32 %v659_v15 }
 0x28e   :  { %v806_v23 = vpop.eup %805  ;;  %v611_v24 = vadd.f32 %v804_v21, %v603_v20  ;;  %825 = vpow2.f32 %v661_v18 }
 0x28f   :  { %v808_v25 = vpop.eup %807  ;;  %v612_v26 = vadd.f32 %v806_v23, %v604_v22 }
 0x290   :  { %v810_v27 = vpop.eup %809  ;;  %v613_v28 = vsel %vm285_vm1, %v611_v24, 0.0 }
 0x291   :  { %v812_v29 = vpop.eup %811  ;;  %v614_v30 = vsel %vm285_vm1, %v612_v26, 0.0 }
 0x292   :  { %v814_v31 = vpop.eup %813  ;;  %v615_v32 = vadd.f32 %v614_v30, %v613_v28  ;;  %v639_v33 = vadd.f32 %v812_v29, %v808_v25 }
 0x293   :  { %v816_v34 = vpop.eup %815  ;;  %v640_v35 = vadd.f32 %v814_v31, %v810_v27 }
 0x294   :  { %v818_v54 = vpop.eup %817  ;;  %616 = vadd.xlane.f32.xlu1 %v615_v32  ;;  %v647_v36 = vadd.f32 %v816_v34, %v639_v33 }
 0x295   :  { %v820_v37 = vpop.eup %819  ;;  %v648_v55 = vadd.f32 %v818_v54, %v640_v35 }
 0x296   :  { %v822_v38 = vpop.eup %821  ;;  %v655_v39 = vadd.f32 %v820_v37, %v647_v36 }
 0x297   :  { %v824_v40 = vpop.eup %823  ;;  %v656_v41 = vadd.f32 %v822_v38, %v648_v55 }
 0x298   :  { %v826_v42 = vpop.eup %825  ;;  %v663_v43 = vadd.f32 %v824_v40, %v655_v39 }
 0x299   :  { %v664_v44 = vadd.f32 %v826_v42, %v656_v41 }
 0x29a   :  { %v665_v45 = vsel %vm285_vm1, %v663_v43, 0.0 }
 0x29b   :  { %v666_v46 = vsel %vm285_vm1, %v664_v44, 0.0 }
 0x29c   :  { %v667_v51 = vadd.f32 %v666_v46, %v665_v45 }
 0x29e   :  { %668 = vadd.xlane.f32.xlu1 %v667_v51 }
 0x317   :  { %v566_v52 = vpop.xlane.xlu1 %565 }
 0x318   :  { %v567_v53 = vrot.slane %v566_v52, 4 }
 0x31a   :  { %v568_v56 = vadd.f32 %v567_v53, %v566_v52 }
 0x31c   :  { %v569_v57 = vrot.slane %v568_v56, 2 }
 0x31e   :  { %v570_v58 = vadd.f32 %v569_v57, %v568_v56 }
 0x320   :  { %v571_v47 = vrot.slane %v570_v58, 1 }
 0x321   :  { %v617_v59 = vpop.xlane.xlu1 %616 }
 0x322   :  { %v618_v60 = vrot.slane %v617_v59, 4  ;;  %v572_v61 = vadd.f32 %v571_v47, %v570_v58 }
 0x324   :  { %v619_v62 = vadd.f32 %v618_v60, %v617_v59  ;;  %750 = vpush %v572_v61 }
 0x326   :  { %v620_v63 = vrot.slane %v619_v62, 2 }
 0x328   :  { %v621_v0 = vadd.f32 %v620_v63, %v619_v62 }
 0x32a   :  { %v622_v1 = vrot.slane %v621_v0, 1 }
 0x32b   :  { %v669_v48 = vpop.xlane.xlu1 %668 }
 0x32c   :  { %v670_v2 = vrot.slane %v669_v48, 4  ;;  %v623_v3 = vadd.f32 %v622_v1, %v621_v0 }
 0x32e   :  { %v671_v4 = vadd.f32 %v670_v2, %v669_v48  ;;  %752 = vpush %v623_v3 }
 0x330   :  { %v672_v5 = vrot.slane %v671_v4, 2 }
 0x332   :  { %v673_v6 = vadd.f32 %v672_v5, %v671_v4 }
 0x334   :  { %v674_v11 = vrot.slane %v673_v6, 1 }
 0x336   :  { %v675_v49 = vadd.f32 %v674_v11, %v673_v6 }
 0x338   :  { %754 = vpush %v675_v49 }
 0x355   :  { %s751_s8 = spop %750 }
 0x356   :  { %v574_v13 = vstv %s751_s8 }
 0x35f   :  { %s753_s9 = spop %752 }
 0x360   :  { %v625_v12 = vstv %s753_s9 }
 0x361   :  { %v626_v14 = vadd.f32 %v625_v12, %v574_v13 }
 0x369   :  { %s755_s10 = spop %754 }
 0x36a   :  { %v677_v8 = vstv %s755_s10 }
 0x36b   :  { %v678_v9 = vmul.f32 2.0, %v677_v8 }
 0x36d   :  { %v679_v7 = vsub.f32 %v626_v14, %v678_v9 }
 0x36f   :  { %v680_v15 = vmul.f32 0.00390625, %v679_v7 }
 0x371   :  { %682 = vst.msk [vmem:[#allocation12] sm:$0x1] %vm681_vm2, %v680_v15 }
 0x372   :  { %882 = shalt.err (!%p879_p6)
}
 0x373   :  { %s883_s17 = scalar_lea.hbm %s1074_s2, 16 }
 0x374   :  { %p884_p7 = scmp.ne.s32.totalorder %s1074_s2, %s883_s17  ;;  %p887_p8 = scmp.lt.u32.totalorder %s883_s17, %s1074_s2 }
 0x376   :  { %p889_p9 = pnand %p887_p8, %p884_p7 }
 0x378   :  { %892 = shalt.err (!%p889_p9)
}
 0x379   :  { %692 = dma.vmem_to_hbm [thread:$0]  %s690_s12, 16, %s1074_s2, [#allocation9]  }
 0x37a   :  { %897 = dma.done.wait [#allocation9], 16  }
 0x37b   :  { %898 = vsyncadd [#allocation9], 4294967280 }
 0x37c   :  { %696 = vsyncpa [#allocation8], 1 }
 0x37d   :  { %697 = vsyncpa [#allocation11], 1 }
 0x37e   :  { %698 = vsyncpa [#allocation9], 1 }

</bundles_post_ra>
